<compile_context>
chip_gen: v6e
topology: v6e:2x2x1
jax: 0.10.0
libtpu: 0.0.40
codegen_flags: <defaults>
</compile_context>

<pallas_src>
import functools

import jax
import jax.numpy as jnp
from jax.experimental import pallas as pl
from jax.experimental.pallas import tpu as pltpu


def _pair(v):
    return (v, v) if isinstance(v, int) else tuple(v)


def _round_up(x, m):
    return (x + m - 1) // m * m


# ----------------------------------------------------------------------------
# Pallas kernel: fused (conv-as-matmul) + folded-BN bias + optional ReLU.
# BN scale is already folded into the weights, so the body is one MXU matmul,
# one VPU add and (optionally) a ReLU.
# ----------------------------------------------------------------------------
def _mm_bias_relu_kernel(x_ref, w_ref, b_ref, o_ref, *, relu):
    acc = jnp.dot(x_ref[...], w_ref[...], preferred_element_type=jnp.float32)
    y = acc + b_ref[...]
    if relu:
        y = jnp.maximum(y, 0.0)
    o_ref[...] = y.astype(o_ref.dtype)


def matmul_bias_relu(x2d, w2d, bias, *, relu, tm=256, tn=256):
    """x2d: (M, K) bf16 patches, w2d: (K, N) bf16 with N % 128 == 0,
    bias: (1, N) f32.  Returns (M, N) f32."""
    M, K = x2d.shape
    Kw, N = w2d.shape
    assert K == Kw, (K, Kw)
    assert N % 128 == 0, N

    # Lane (output-channel) tile: a multiple of 128 that divides N.
    tn = min(tn, N)
    while N % tn != 0:
        tn -= 128

    # Pixel-axis tile: pad M so the grid divides evenly (padded rows are sliced
    # off by the caller).  Multiples of 16 keep bf16 sublane packing dense.
    tm = min(tm, _round_up(M, 16))
    Mp = _round_up(M, tm)
    if Mp != M:
        x2d = jnp.pad(x2d, ((0, Mp - M), (0, 0)))

    kernel = functools.partial(_mm_bias_relu_kernel, relu=relu)
    out = pl.pallas_call(
        kernel,
        out_shape=jax.ShapeDtypeStruct((Mp, N), jnp.float32),
        grid_spec=pltpu.PrefetchScalarGridSpec(
            num_scalar_prefetch=0,
            grid=(Mp // tm, N // tn),
            in_specs=[
                pl.BlockSpec((tm, K), lambda i, j: (i, 0)),
                pl.BlockSpec((K, tn), lambda i, j: (0, j)),
                pl.BlockSpec((1, tn), lambda i, j: (0, j)),
            ],
            out_specs=pl.BlockSpec((tm, tn), lambda i, j: (i, j)),
        ),
        compiler_params=pltpu.CompilerParams(
            dimension_semantics=("parallel", "parallel"),
            vmem_limit_bytes=48 * 1024 * 1024,
        ),
    )(x2d, w2d, bias)
    return out[:M]


# ----------------------------------------------------------------------------
# JAX glue: im2col for arbitrary kernel_size / stride / padding / dilation.
# Patch column order is (kh, kw, cin), matching the weight layout below.
# ----------------------------------------------------------------------------
def _im2col(x_nhwc, ksize, stride, padding, dilation):
    b, h, w, c = x_nhwc.shape
    kh, kw = ksize
    sh, sw = stride
    ph, pw = padding
    dh, dw = dilation
    xp = jnp.pad(x_nhwc, ((0, 0), (ph, ph), (pw, pw), (0, 0)))
    hp, wp = h + 2 * ph, w + 2 * pw
    h_out = (hp - dh * (kh - 1) - 1) // sh + 1
    w_out = (wp - dw * (kw - 1) - 1) // sw + 1
    cols = []
    for i in range(kh):
        for j in range(kw):
            r0, c0 = i * dh, j * dw
            cols.append(xp[:, r0:r0 + (h_out - 1) * sh + 1:sh,
                           c0:c0 + (w_out - 1) * sw + 1:sw, :])
    patches = jnp.concatenate(cols, axis=-1)          # (b, h_out, w_out, kh*kw*c)
    return patches.reshape(b * h_out * w_out, kh * kw * c), h_out, w_out


# ----------------------------------------------------------------------------
# Parameters: conv weight + inference-mode BN, folded and 128-padded.
# ----------------------------------------------------------------------------
def init_params(key, c_in, c_out, kernel_size, eps=1e-5):
    kh, kw = _pair(kernel_size)
    fan_in = kh * kw * c_in
    k1, k2, k3, k4, k5 = jax.random.split(key, 5)
    # Conv weight in (kh, kw, c_in, c_out) layout (== PyTorch weight.permute(2,3,1,0)).
    w = jax.random.normal(k1, (kh, kw, c_in, c_out), dtype=jnp.float32) / jnp.sqrt(fan_in)
    gamma = jax.random.uniform(k2, (c_out,), minval=0.5, maxval=1.5)
    beta = 0.1 * jax.random.normal(k3, (c_out,))
    mean = 0.1 * jax.random.normal(k4, (c_out,))
    var = jax.random.uniform(k5, (c_out,), minval=0.5, maxval=1.5)
    scale = gamma / jnp.sqrt(var + eps)
    shift = (beta - mean * scale).astype(jnp.float32)

    # Fold BN scale into the conv weights (removes one VPU mul per output elem).
    w_folded = (w * scale).reshape(fan_in, c_out).astype(jnp.float32)
    # Pad output channels to a multiple of 128 for lane-dense MXU output/stores.
    c_pad = _round_up(c_out, 128)
    kernel_params = dict(
        w=jnp.pad(w_folded, ((0, 0), (0, c_pad - c_out))).astype(jnp.bfloat16),
        bias=jnp.pad(shift, (0, c_pad - c_out)).reshape(1, c_pad).astype(jnp.float32),
    )
    ref_params = dict(w=w_folded, bias=shift)
    return kernel_params, ref_params


# ----------------------------------------------------------------------------
# ConvBNReLU forward (NCHW in / NCHW out, like the PyTorch module).
# ----------------------------------------------------------------------------
def conv_bn_relu_forward(x_nchw, params, *, c_out, kernel_size, stride=1,
                         padding=0, dilation=1, use_relu=True):
    b = x_nchw.shape[0]
    x_nhwc = jnp.transpose(x_nchw.astype(jnp.float32), (0, 2, 3, 1))
    patches, h_out, w_out = _im2col(x_nhwc, _pair(kernel_size), _pair(stride),
                                    _pair(padding), _pair(dilation))
    y = matmul_bias_relu(patches.astype(jnp.bfloat16), params['w'],
                         params['bias'], relu=use_relu)
    y = y[:, :c_out].reshape(b, h_out, w_out, c_out)
    return jnp.transpose(y, (0, 3, 1, 2))


def conv_bn_relu_reference(x_nchw, ref_params, *, kernel_size, stride=1,
                           padding=0, dilation=1, use_relu=True):
    """Pure-JAX f32 reference (conv as im2col matmul + folded BN + ReLU)."""
    b = x_nchw.shape[0]
    c_out = ref_params['w'].shape[1]
    x_nhwc = jnp.transpose(x_nchw.astype(jnp.float32), (0, 2, 3, 1))
    patches, h_out, w_out = _im2col(x_nhwc, _pair(kernel_size), _pair(stride),
                                    _pair(padding), _pair(dilation))
    y = patches @ ref_params['w'] + ref_params['bias']
    if use_relu:
        y = jnp.maximum(y, 0.0)
    return jnp.transpose(y.reshape(b, h_out, w_out, c_out), (0, 3, 1, 2))


# ----------------------------------------------------------------------------
if __name__ == "__main__":
    key = jax.random.PRNGKey(0)
    k_x1, k_x2, k_p = jax.random.split(key, 3)

    C_IN, C_OUT = 8, 32
    params, ref_params = init_params(k_p, C_IN, C_OUT, kernel_size=3)

    # Config 1: 3x3, stride 1, padding 1, dilation 1, with ReLU.
    x1 = jax.random.normal(k_x1, (2, C_IN, 16, 16), dtype=jnp.float32)
    fwd1 = jax.jit(functools.partial(conv_bn_relu_forward, c_out=C_OUT,
                                     kernel_size=3, stride=1, padding=1,
                                     dilation=1, use_relu=True))
    out1 = jax.block_until_ready(fwd1(x1, params))
    ref1 = conv_bn_relu_reference(x1, ref_params, kernel_size=3, stride=1,
                                  padding=1, dilation=1, use_relu=True)
    assert out1.shape == (2, C_OUT, 16, 16), out1.shape
    assert bool(jnp.all(jnp.isfinite(out1)))
    assert bool(jnp.allclose(out1, ref1, atol=1e-1, rtol=1e-1)), \
        float(jnp.max(jnp.abs(out1 - ref1)))

    # Config 2: 3x3, stride 1, padding 2, dilation 2, no ReLU, odd spatial size
    # (exercises the non-tile-aligned M padding path).
    x2 = jax.random.normal(k_x2, (2, C_IN, 15, 15), dtype=jnp.float32)
    fwd2 = jax.jit(functools.partial(conv_bn_relu_forward, c_out=C_OUT,
                                     kernel_size=3, stride=1, padding=2,
                                     dilation=2, use_relu=False))
    out2 = jax.block_until_ready(fwd2(x2, params))
    ref2 = conv_bn_relu_reference(x2, ref_params, kernel_size=3, stride=1,
                                  padding=2, dilation=2, use_relu=False)
    assert out2.shape == (2, C_OUT, 15, 15), out2.shape
    assert bool(jnp.all(jnp.isfinite(out2)))
    assert bool(jnp.allclose(out2, ref2, atol=1e-1, rtol=1e-1)), \
        float(jnp.max(jnp.abs(out2 - ref2)))

    print("KERNEL_OK")
</pallas_src>

<mosaic_0001>
module attributes {stable_mosaic.version = 11 : i64} {
  func.func @_mm_bias_relu_kernel(%arg0: i32, %arg1: i32, %arg2: memref<256x72xbf16, #tpu.memory_space<vmem>>, %arg3: memref<72x128xbf16, #tpu.memory_space<vmem>>, %arg4: memref<1x128xf32, #tpu.memory_space<vmem>>, %arg5: memref<256x128xf32, #tpu.memory_space<vmem>>) attributes {dimension_semantics = [#tpu.dimension_semantics<parallel>, #tpu.dimension_semantics<parallel>], iteration_bounds = array<i64: 2, 1>, scalar_prefetch = 0 : i64, scratch_operands = 0 : i64, tpu.core_type = #tpu.core_type<tc>, window_params = [{transform_indices = @transform_0, window_bounds = array<i64: 256, 72>}, {transform_indices = @transform_1, window_bounds = array<i64: 72, 128>}, {transform_indices = @transform_2, window_bounds = array<i64: 1, 128>}, {transform_indices = @transform_3, window_bounds = array<i64: 256, 128>}]} {
    %c0 = arith.constant 0 : index
    %c0_0 = arith.constant 0 : index
    %0 = vector.load %arg2[%c0, %c0_0] : memref<256x72xbf16, #tpu.memory_space<vmem>>, vector<256x72xbf16>
    %c0_1 = arith.constant 0 : index
    %c0_2 = arith.constant 0 : index
    %1 = vector.load %arg3[%c0_1, %c0_2] : memref<72x128xbf16, #tpu.memory_space<vmem>>, vector<72x128xbf16>
    %cst = arith.constant dense<0.000000e+00> : vector<256x128xf32>
    %2 = tpu.matmul %0, %1, %cst {dimension_numbers = #tpu.dot_dimension_numbers<[1], [0], [0], [1], [0, 0, 1, 1], [], []>} : vector<256x72xbf16>, vector<72x128xbf16>, vector<256x128xf32> -> vector<256x128xf32>
    %c0_3 = arith.constant 0 : index
    %c0_4 = arith.constant 0 : index
    %3 = vector.load %arg4[%c0_3, %c0_4] : memref<1x128xf32, #tpu.memory_space<vmem>>, vector<1x128xf32>
    %4 = vector.broadcast %3 : vector<1x128xf32> to vector<256x128xf32>
    %5 = arith.addf %2, %4 : vector<256x128xf32>
    %cst_5 = arith.constant 0.000000e+00 : f32
    %6 = vector.broadcast %cst_5 : f32 to vector<256x128xf32>
    %7 = arith.maximumf %5, %6 : vector<256x128xf32>
    %c0_6 = arith.constant 0 : index
    %c0_7 = arith.constant 0 : index
    %8 = vector.load %arg5[%c0_6, %c0_7] : memref<256x128xf32, #tpu.memory_space<vmem>>, vector<256x128xf32>
    tpu.vector_store %arg5[%c0_6, %c0_7], %7 {strides = array<i32>} : memref<256x128xf32, #tpu.memory_space<vmem>>, vector<256x128xf32>,
    return
  }
  func.func @transform_0(%arg0: i32, %arg1: i32) -> (i32, i32) {
    %c0_i32 = arith.constant 0 : i32
    %c0_i32_0 = arith.constant 0 : i32
    return %arg0, %c0_i32 : i32, i32
  }
  func.func @transform_1(%arg0: i32, %arg1: i32) -> (i32, i32) {
    %c0_i32 = arith.constant 0 : i32
    %c0_i32_0 = arith.constant 0 : i32
    return %c0_i32, %arg1 : i32, i32
  }
  func.func @transform_2(%arg0: i32, %arg1: i32) -> (i32, i32) {
    %c0_i32 = arith.constant 0 : i32
    %c0_i32_0 = arith.constant 0 : i32
    return %c0_i32, %arg1 : i32, i32
  }
  func.func @transform_3(%arg0: i32, %arg1: i32) -> (i32, i32) {
    %c0_i32 = arith.constant 0 : i32
    return %arg0, %arg1 : i32, i32
  }
}

</mosaic_0001>

<bundles_post_ra>
// kernel: conv_bn_relu_forward.1
= control target key start
LH: loop header
LB: loop body
LE: loop exit
PB: predicated region body
PF: predicated region fallthrough
CT: control target
= control target key end

     0   :  { %8 = vsyncpa [#allocation3], 0  ;;  %s1311_s0 = inlined_call_operand.vmem [shape: bf16[512,72], index: 0, kind: input, shape index: {}]   ;;  %s1312_s1 = inlined_call_operand.vmem [shape: bf16[72,128], index: 1, kind: input, shape index: {}]   ;;  %s1313_s2 = inlined_call_operand.vmem [shape: f32[1,128], index: 2, kind: input, shape index: {}]   ;;  %s1314_s3 = inlined_call_operand.hbm [shape: f32[512,128], index: 3, kind: output, shape index: {}]  }
   0x1   :  { %10 = vsyncpa [#allocation3 + $0x1], 0  ;;  %s1073_s12 = smov 0   ;;  %s1075_s13 = smov 0  }
   0x2   :  { %s1077_s14 = smov 0   ;;  %s1079_s15 = smov 0  }
   0x3   :  { %s1081_s16 = smov 0   ;;  %s1083_s17 = smov 0  }
   0x4 LB: > { %s765_s18 = sadd.s32 4294967295, %s1048_s17   ;;  %s766_s19 = sadd.s32 4294967294, %s1048_s17   ;;  %s1048_s17 = sphi %s1083_s17, %s16_s17   ;;  %s1044_s16 = sphi %s1081_s16, %s1321_s16   ;;  %s1040_s15 = sphi %s1079_s15, %s1320_s15   ;;  %s1036_s14 = sphi %s1077_s14, %s1319_s14   ;;  %s1032_s13 = sphi %s1075_s13, %s1318_s13   ;;  %s1028_s12 = sphi %s1073_s12, %s1317_s12  }
   0x5   : > { %s28_s20 = sadd.s32 1, %s1044_s16  ;;  %s115_s21 = sadd.s32 1, %s1036_s14 }
   0x6   : > { %p30_p0 = scmp.ge.s32.totalorder %s28_s20, 2  ;;  %p125_p1 = scmp.ne.s32.totalorder %s1036_s14, %s1032_s13 }
   0x7   : > { %p126_p2 = scmp.eq.s32.totalorder %s765_s18, 1  ;;  %p131_p3 = scmp.ne.s32.totalorder %s1032_s13, %s1028_s12 }
   0x8   : > { %s1323_s20 = smov (%p30_p0, %s28_s20), 0  ;;  %p132_p5 = scmp.eq.s32.totalorder %s766_s19, 1 }
   0x9   : > { %p1113_p4 = por %p126_p2, %p125_p1  ;;  %s110_s23 = ssub.s32 %s1044_s16, %s1323_s20 }
   0xa   : > { %p771_p6 = scmp.ge.s32.totalorder %s1048_s17, 1  ;;  %p113_p7 = scmp.eq.s32.totalorder %s110_s23, 0 }
   0xb   : > { %p1120_p8 = por %p132_p5, %p131_p3  ;;  %p172_p9 = scmp.lt.s32.totalorder %s1048_s17, 3 }
   0xc   : > { %s1126_s25 = scalar_select %p113_p7, %s1036_s14, %s115_s21  }
   0xd   : > { %p173_p10 = pnand %p771_p6, %p172_p9 }
   0xe   : > { %s773_s30 = sshll.u32 (!%p173_p10), %s1040_s15, 5  ;;  %s200_s21 = sand.u32 (!%p173_p10), 1, %s1032_s13  }
   0xf   : > { %176 = sbr.rel (%p173_p10) target bundleno = 282 (0x11a), region = 32  ;;  %p204_p11 = scmp.lt.s32.totalorder (!%p173_p10), %s773_s30, 63 }
  0x10   : > { %s772_s27 = sshll.u32 (!%p173_p10), %s200_s21, 8  ;;  %s818_s29 = sshll.u32 (!%p173_p10), %s1040_s15, 12 }
  0x11   : > { %s1193_s28 = scalar_lea.vmem (!%p173_p10), [#allocation2], %s772_s27  ;;  %s1256_s6 = scalar_lea.hbm (!%p173_p10), %s1314_s3, %s818_s29 }
  0x12   : > { %s1266_s15 = scalar_lea.sflag (!%p173_p10), [#allocation3], %s200_s21 }
  0x14   : > { %v951_v0 = vld [vmem:[%s1312_s1 + $0x20] ss:$0 sps:$4 sm:$0xff]   ;;  %vm422_vm0 = vcmask 1043456   ;;  %v952_v1 = vld [vmem:[%s1312_s1 + $0x18] sm:$0xff]   ;;  %v953_v3 = vld [vmem:[%s1312_s1 + $0x10] sm:$0xff]   ;;  %s1325_s30 = smov (!%p204_p11, %s773_s30), 63 }
  0x15   : > { %892 = vmatprep.subr.msk.bf16.mxu0 %vm422_vm0, %v951_v0  ;;  %893 = vmatprep.subr.msk.bf16.mxu1 %vm422_vm0, %v951_v0  ;;  %v424_v2 = vsel %vm422_vm0, %v951_v0, 0  ;;  %v954_v4 = vld [vmem:[%s1312_s1 + $0x8] sm:$0xff]   ;;  %s774_s8 = sshll.u32 %s1325_s30, 2  ;;  %vm373_vm1 = vcmask 588800   ;;  %v955_v7 = vld [vmem:[%s1312_s1] sm:$0xff]   ;;  %s666_s30 = sshll.u32 %s1193_s28, 4  ;;  %s1258_s30 = int_to_ptr.vmem [resolvable:$true] %s666_s30 }
  0x16   : > { %841 = vmatpush3.bf16.msra.mxu0 %v424_v2  ;;  %887 = vmatpush3.bf16.msra.mxu1 %v424_v2  ;;  %s1144_s11 = scalar_lea.vmem %s1311_s0, %s774_s8  ;;  %v1185_v22 = vld [vmem:[%s1313_s2] ss:$0 sm:$0xff]  ;;  %s972_s7 = scalar_lea.vmem %s1258_s30, 4096 }
  0x17   : > { %842 = vmatprep.subr.bf16.mxu0 %v952_v1  ;;  %883 = vmatprep.subr.bf16.mxu1 %v952_v1  ;;  %v956_v5 = vld [vmem:[%s1144_s11] sm:$0xff]   ;;  %v958_v8 = vld [vmem:[%s1144_s11 + $0x8] sm:$0xff]   ;;  %v960_v10 = vld [vmem:[%s1144_s11 + $0x10] sm:$0xff]   ;;  %p973_p12 = scmp.ne.s32.totalorder %s1258_s30, %s972_s7  ;;  %s1050_s8 = smov [#allocation2]  }
  0x18   : > { %v957_v6 = vld [vmem:[%s1144_s11 + $0x40] sm:$0xff]   ;;  %850 = vmatprep.mubr.msk.bf16.mxu0 %vm373_vm1, %v956_v5  ;;  %v959_v9 = vld [vmem:[%s1144_s11 + $0x48] sm:$0xff]   ;;  %v961_v11 = vld [vmem:[%s1144_s11 + $0x50] sm:$0xff]   ;;  %s976_s9 = sshll.u32 %s1050_s8, 4  ;;  %s977_s9 = int_to_ptr.vmem [resolvable:$false] %s976_s9 }
  0x19   : > { %866 = vmatprep.mubr.msk.bf16.mxu1 %vm373_vm1, %v957_v6  ;;  %v962_v12 = vld [vmem:[%s1144_s11 + $0x18] sm:$0xff]   ;;  %v964_v14 = vld [vmem:[%s1144_s11 + $0x20] sm:$0xff]   ;;  %v966_v16 = vld [vmem:[%s1144_s11 + $0x28] sm:$0xff]   ;;  %p974_p13 = pnand %p973_p12, %p1113_p4  ;;  %s978_s10 = scalar_lea.vmem %s977_s9, 8192 }
  0x1a   : > { %843 = vmatpush3.bf16.msra.mxu0 %v952_v1  ;;  %888 = vmatpush3.bf16.msra.mxu1 %v952_v1  ;;  %v963_v13 = vld [vmem:[%s1144_s11 + $0x58] sm:$0xff]   ;;  %v965_v15 = vld [vmem:[%s1144_s11 + $0x60] sm:$0xff]   ;;  %v967_v17 = vld [vmem:[%s1144_s11 + $0x68] sm:$0xff]   ;;  %p979_p1 = scmp.lt.s32.totalorder %s1258_s30, %s977_s9  ;;  %p980_p2 = scmp.lt.s32.totalorder %s978_s10, %s972_s7 }
  0x1b   : > { %844 = vmatprep.subr.bf16.mxu0 %v953_v3  ;;  %884 = vmatprep.subr.bf16.mxu1 %v953_v3  ;;  %v968_v18 = vld [vmem:[%s1144_s11 + $0x30] sm:$0xff]   ;;  %v970_v20 = vld [vmem:[%s1144_s11 + $0x38] sm:$0xff]   ;;  %p975_p0 = pneg %p974_p13 }
  0x1c   : > { %v969_v19 = vld [vmem:[%s1144_s11 + $0x70] sm:$0xff]   ;;  %v971_v21 = vld [vmem:[%s1144_s11 + $0x78] sm:$0xff]   ;;  %p981_p3 = por %p980_p2, %p979_p1 }
  0x1e   : > { %845 = vmatpush3.bf16.msra.mxu0 %v953_v3  ;;  %889 = vmatpush3.bf16.msra.mxu1 %v953_v3  ;;  %p982_p5 = pnand %p981_p3, %p975_p0 }
  0x1f   : > { %846 = vmatprep.subr.bf16.mxu0 %v954_v4  ;;  %885 = vmatprep.subr.bf16.mxu1 %v954_v4 }
  0x22   : > { %847 = vmatpush3.bf16.msra.mxu0 %v954_v4  ;;  %890 = vmatpush3.bf16.msra.mxu1 %v954_v4 }
  0x23   : > { %848 = vmatprep.subr.bf16.mxu0 %v955_v7  ;;  %886 = vmatprep.subr.bf16.mxu1 %v955_v7 }
  0x26   : > { %849 = vmatpush3.bf16.msra.mxu0 %v955_v7  ;;  %891 = vmatpush3.bf16.msra.mxu1 %v955_v7 }
  0x29   : > { %851 = vmatmul.mubr.msk.bf16.vlgmr.msra.gmra.mxu0 %vm373_vm1, %v958_v8  ;;  %867 = vmatmul.mubr.msk.bf16.vlgmr.msra.gmra.mxu1 %vm373_vm1, %v959_v9 }
  0x2a   : > { %854 = vmatprep.mubr.msk.bf16.mxu0 %vm373_vm1, %v960_v10  ;;  %870 = vmatprep.mubr.msk.bf16.mxu1 %vm373_vm1, %v961_v11 }
  0x31   : > { %855 = vmatmul.mubr.msk.bf16.gmra.mxu0 %vm373_vm1, %v962_v12  ;;  %871 = vmatmul.mubr.msk.bf16.gmra.mxu1 %vm373_vm1, %v963_v13 }
  0x32   : > { %858 = vmatprep.mubr.msk.bf16.mxu0 %vm373_vm1, %v964_v14  ;;  %874 = vmatprep.mubr.msk.bf16.mxu1 %vm373_vm1, %v965_v15 }
  0x39   : > { %859 = vmatmul.mubr.msk.bf16.gmra.mxu0 %vm373_vm1, %v966_v16  ;;  %875 = vmatmul.mubr.msk.bf16.gmra.mxu1 %vm373_vm1, %v967_v17 }
  0x3a   : > { %862 = vmatprep.mubr.msk.bf16.mxu0 %vm373_vm1, %v968_v18  ;;  %878 = vmatprep.mubr.msk.bf16.mxu1 %vm373_vm1, %v969_v19 }
  0x41   : > { %863 = vmatmul.mubr.msk.bf16.gmra.mxu0 %vm373_vm1, %v970_v20  ;;  %879 = vmatmul.mubr.msk.bf16.gmra.mxu1 %vm373_vm1, %v971_v21 }
  0xe9   : > { %v852_v23 = vpop.f32.mrf.mxu0  ;;  %v868_v24 = vpop.f32.mrf.mxu1 }
  0xea   : > { %v469_v25 = vadd.f32 %v852_v23, %v1185_v22  ;;  %v533_v26 = vadd.f32 %v868_v24, %v1185_v22 }
  0xeb   : > { %v460_v27 = vpop.f32.mrf.mxu0  ;;  %v524_v28 = vpop.f32.mrf.mxu1 }
  0xec   : > { %v589_v29 = vmax.f32 %v469_v25, 0.0  ;;  %v605_v30 = vmax.f32 %v533_v26, 0.0  ;;  %v461_v31 = vadd.f32 %v1185_v22, %v460_v27  ;;  %v525_v32 = vadd.f32 %v1185_v22, %v524_v28 }
  0xed   : > { %v853_v33 = vpop.f32.mrf.mxu0  ;;  %v869_v34 = vpop.f32.mrf.mxu1 }
  0xee   : > { %621 = vst [vmem:[%s1193_s28 + $0x10] sm:$0xff] %v589_v29  ;;  %637 = vst [vmem:[%s1193_s28 + $0x90] sm:$0xff] %v605_v30  ;;  %v587_v35 = vmax.f32 %v461_v31, 0.0  ;;  %v603_v36 = vmax.f32 %v525_v32, 0.0  ;;  %v472_v37 = vadd.f32 %v853_v33, %v1185_v22  ;;  %v536_v38 = vadd.f32 %v869_v34, %v1185_v22 }
  0xef   : > { %v463_v39 = vpop.f32.mrf.mxu0  ;;  %v527_v40 = vpop.f32.mrf.mxu1 }
  0xf0   : > { %619 = vst [vmem:[%s1193_s28] sm:$0xff] %v587_v35  ;;  %635 = vst [vmem:[%s1193_s28 + $0x80] sm:$0xff] %v603_v36  ;;  %v590_v41 = vmax.f32 %v472_v37, 0.0  ;;  %v606_v42 = vmax.f32 %v536_v38, 0.0  ;;  %v464_v43 = vadd.f32 %v1185_v22, %v463_v39  ;;  %v528_v44 = vadd.f32 %v1185_v22, %v527_v40 }
  0xf1   : > { %v856_v45 = vpop.f32.mrf.mxu0  ;;  %v872_v46 = vpop.f32.mrf.mxu1 }
  0xf2   : > { %622 = vst [vmem:[%s1193_s28 + $0x18] sm:$0xff] %v590_v41  ;;  %638 = vst [vmem:[%s1193_s28 + $0x98] sm:$0xff] %v606_v42  ;;  %v588_v47 = vmax.f32 %v464_v43, 0.0  ;;  %v604_v48 = vmax.f32 %v528_v44, 0.0  ;;  %v485_v49 = vadd.f32 %v856_v45, %v1185_v22  ;;  %v549_v50 = vadd.f32 %v872_v46, %v1185_v22 }
  0xf3   : > { %v476_v51 = vpop.f32.mrf.mxu0  ;;  %v540_v52 = vpop.f32.mrf.mxu1 }
  0xf4   : > { %620 = vst [vmem:[%s1193_s28 + $0x8] sm:$0xff] %v588_v47  ;;  %636 = vst [vmem:[%s1193_s28 + $0x88] sm:$0xff] %v604_v48  ;;  %v593_v53 = vmax.f32 %v485_v49, 0.0  ;;  %v609_v54 = vmax.f32 %v549_v50, 0.0  ;;  %v477_v55 = vadd.f32 %v1185_v22, %v476_v51  ;;  %v541_v56 = vadd.f32 %v1185_v22, %v540_v52 }
  0xf5   : > { %v857_v57 = vpop.f32.mrf.mxu0  ;;  %v873_v58 = vpop.f32.mrf.mxu1 }
  0xf6   : > { %625 = vst [vmem:[%s1193_s28 + $0x30] sm:$0xff] %v593_v53  ;;  %641 = vst [vmem:[%s1193_s28 + $0xb0] sm:$0xff] %v609_v54  ;;  %v591_v59 = vmax.f32 %v477_v55, 0.0  ;;  %v607_v60 = vmax.f32 %v541_v56, 0.0  ;;  %v488_v61 = vadd.f32 %v857_v57, %v1185_v22  ;;  %v552_v62 = vadd.f32 %v873_v58, %v1185_v22 }
  0xf7   : > { %v479_v63 = vpop.f32.mrf.mxu0  ;;  %v543_v0 = vpop.f32.mrf.mxu1 }
  0xf8   : > { %623 = vst [vmem:[%s1193_s28 + $0x20] sm:$0xff] %v591_v59  ;;  %639 = vst [vmem:[%s1193_s28 + $0xa0] sm:$0xff] %v607_v60  ;;  %v594_v1 = vmax.f32 %v488_v61, 0.0  ;;  %v610_v2 = vmax.f32 %v552_v62, 0.0  ;;  %v480_v3 = vadd.f32 %v1185_v22, %v479_v63  ;;  %v544_v4 = vadd.f32 %v1185_v22, %v543_v0 }
  0xf9   : > { %v860_v5 = vpop.f32.mrf.mxu0  ;;  %v876_v6 = vpop.f32.mrf.mxu1 }
  0xfa   : > { %626 = vst [vmem:[%s1193_s28 + $0x38] sm:$0xff] %v594_v1  ;;  %642 = vst [vmem:[%s1193_s28 + $0xb8] sm:$0xff] %v610_v2  ;;  %v592_v7 = vmax.f32 %v480_v3, 0.0  ;;  %v608_v8 = vmax.f32 %v544_v4, 0.0  ;;  %v501_v9 = vadd.f32 %v860_v5, %v1185_v22  ;;  %v565_v10 = vadd.f32 %v876_v6, %v1185_v22 }
  0xfb   : > { %v492_v11 = vpop.f32.mrf.mxu0  ;;  %v556_v12 = vpop.f32.mrf.mxu1 }
  0xfc   : > { %624 = vst [vmem:[%s1193_s28 + $0x28] sm:$0xff] %v592_v7  ;;  %640 = vst [vmem:[%s1193_s28 + $0xa8] sm:$0xff] %v608_v8  ;;  %v597_v13 = vmax.f32 %v501_v9, 0.0  ;;  %v613_v14 = vmax.f32 %v565_v10, 0.0  ;;  %v493_v15 = vadd.f32 %v1185_v22, %v492_v11  ;;  %v557_v16 = vadd.f32 %v1185_v22, %v556_v12 }
  0xfd   : > { %v861_v17 = vpop.f32.mrf.mxu0  ;;  %v877_v18 = vpop.f32.mrf.mxu1 }
  0xfe   : > { %629 = vst [vmem:[%s1193_s28 + $0x50] sm:$0xff] %v597_v13  ;;  %645 = vst [vmem:[%s1193_s28 + $0xd0] sm:$0xff] %v613_v14  ;;  %v595_v19 = vmax.f32 %v493_v15, 0.0  ;;  %v611_v20 = vmax.f32 %v557_v16, 0.0  ;;  %v504_v21 = vadd.f32 %v861_v17, %v1185_v22  ;;  %v568_v23 = vadd.f32 %v877_v18, %v1185_v22 }
  0xff   : > { %v495_v24 = vpop.f32.mrf.mxu0  ;;  %v559_v25 = vpop.f32.mrf.mxu1 }
 0x100   : > { %627 = vst [vmem:[%s1193_s28 + $0x40] sm:$0xff] %v595_v19  ;;  %643 = vst [vmem:[%s1193_s28 + $0xc0] sm:$0xff] %v611_v20  ;;  %v598_v26 = vmax.f32 %v504_v21, 0.0  ;;  %v614_v27 = vmax.f32 %v568_v23, 0.0  ;;  %v496_v28 = vadd.f32 %v1185_v22, %v495_v24  ;;  %v560_v29 = vadd.f32 %v1185_v22, %v559_v25 }
 0x101   : > { %v864_v30 = vpop.f32.mrf.mxu0  ;;  %v880_v31 = vpop.f32.mrf.mxu1 }
 0x102   : > { %630 = vst [vmem:[%s1193_s28 + $0x58] sm:$0xff] %v598_v26  ;;  %646 = vst [vmem:[%s1193_s28 + $0xd8] sm:$0xff] %v614_v27  ;;  %v596_v32 = vmax.f32 %v496_v28, 0.0  ;;  %v612_v33 = vmax.f32 %v560_v29, 0.0  ;;  %v517_v34 = vadd.f32 %v864_v30, %v1185_v22  ;;  %v581_v35 = vadd.f32 %v880_v31, %v1185_v22 }
 0x103   : > { %v508_v36 = vpop.f32.mrf.mxu0  ;;  %v572_v37 = vpop.f32.mrf.mxu1 }
 0x104   : > { %628 = vst [vmem:[%s1193_s28 + $0x48] sm:$0xff] %v596_v32  ;;  %644 = vst [vmem:[%s1193_s28 + $0xc8] sm:$0xff] %v612_v33  ;;  %v601_v38 = vmax.f32 %v517_v34, 0.0  ;;  %v617_v39 = vmax.f32 %v581_v35, 0.0  ;;  %v509_v40 = vadd.f32 %v1185_v22, %v508_v36  ;;  %v573_v41 = vadd.f32 %v1185_v22, %v572_v37 }
 0x105   : > { %v865_v42 = vpop.f32.mrf.mxu0  ;;  %v881_v43 = vpop.f32.mrf.mxu1 }
 0x106   : > { %633 = vst [vmem:[%s1193_s28 + $0x70] sm:$0xff] %v601_v38  ;;  %649 = vst [vmem:[%s1193_s28 + $0xf0] sm:$0xff] %v617_v39  ;;  %v599_v44 = vmax.f32 %v509_v40, 0.0  ;;  %v615_v45 = vmax.f32 %v573_v41, 0.0  ;;  %v520_v46 = vadd.f32 %v865_v42, %v1185_v22  ;;  %v584_v47 = vadd.f32 %v881_v43, %v1185_v22 }
 0x107   : > { %v511_v48 = vpop.f32.mrf.mxu0  ;;  %v575_v49 = vpop.f32.mrf.mxu1 }
 0x108   : > { %631 = vst [vmem:[%s1193_s28 + $0x60] sm:$0xff] %v599_v44  ;;  %647 = vst [vmem:[%s1193_s28 + $0xe0] sm:$0xff] %v615_v45  ;;  %v602_v50 = vmax.f32 %v520_v46, 0.0  ;;  %v618_v51 = vmax.f32 %v584_v47, 0.0  ;;  %v512_v52 = vadd.f32 %v1185_v22, %v511_v48  ;;  %v576_v53 = vadd.f32 %v1185_v22, %v575_v49 }
 0x10a   : > { %634 = vst [vmem:[%s1193_s28 + $0x78] sm:$0xff] %v602_v50  ;;  %650 = vst [vmem:[%s1193_s28 + $0xf8] sm:$0xff] %v618_v51  ;;  %v600_v54 = vmax.f32 %v512_v52, 0.0  ;;  %v616_v55 = vmax.f32 %v576_v53, 0.0 }
 0x10c   : > { %632 = vst [vmem:[%s1193_s28 + $0x68] sm:$0xff] %v600_v54  ;;  %648 = vst [vmem:[%s1193_s28 + $0xe8] sm:$0xff] %v616_v55 }
 0x10d   : > { %985 = shalt.err (!%p982_p5)
}
 0x10e   : > { %s986_s11 = scalar_lea.hbm %s1256_s6, 4096  ;;  %s990_s21 = scalar_lea.hbm %s1314_s3, 8192 }
 0x10f   : > { %p987_p6 = scmp.ne.s32.totalorder %s1256_s6, %s986_s11  ;;  %p991_p10 = scmp.lt.s32.totalorder %s1256_s6, %s1314_s3 }
 0x110   : > { %p992_p11 = scmp.lt.s32.totalorder %s990_s21, %s986_s11 }
 0x111   : > { %p988_p7 = pnand %p987_p6, %p1113_p4 }
 0x112   : > { %p993_p12 = por %p992_p11, %p991_p10 }
 0x113   : > { %p989_p9 = pneg %p988_p7 }
 0x115   : > { %p994_p13 = pnand %p993_p12, %p989_p9 }
 0x117   : > { %997 = shalt.err (!%p994_p13)
}
 0x118   : > { %s1051_s27 = smov 128   ;;  %s1052_s28 = smov 8  }
 0x119   : > { %894 = dma.vmem_to_hbm [thread:$0]  (%p1113_p4), %s1258_s30, 4096, %s1256_s6, %s1266_s15, %s1051_s27, %s1051_s27, %s1052_s28  }
 0x11a PF: > { %p900_p0 = scmp.ge.s32.totalorder %s1048_s17, 2  ;;  %s681_s29 = sand.u32 1, %s1028_s12  }
 0x11b   : > { %s682_s4 = scalar_lea.sflag [#allocation3], %s681_s29 }
 0x11c   : > { %p897_p1 = pnand %p900_p0, %p1120_p8 }
 0x11e   : > { %p898_p2 = pneg %p897_p1 }
 0x120   : > { %1023 = dma.done.wait (%p898_p2), %s682_s4, 4096  }
 0x121   : > { %1025 = vsyncadd (%p898_p2), %s682_s4, 4294963200  ;;  %s16_s17 = sadd.s32 1, %s1048_s17   ;;  %s1317_s12 = smov %s1032_s13 }
 0x122   : > { %p13_p3 = scmp.ge.s32.totalorder %s16_s17, 4   ;;  %s1318_s13 = smov %s1036_s14 }
 0x123   : > { %s1319_s14 = smov %s1126_s25  ;;  %s1320_s15 = smov %s1044_s16 }
 0x124   : > { %s1321_s16 = smov %s1323_s20  ;;  %15 = sbr.rel (!%p13_p3) target bundleno = 4 (0x4), region = 73 }
 0x129   :  { %687 = vsyncpa [#allocation3], 1 }
 0x12a   :  { %689 = vsyncpa [#allocation3 + $0x1], 1 }

</bundles_post_ra>
